<compile_context>
chip_gen: v5e
topology: v5e:2x2
jax: 0.10.0
libtpu: 0.0.40
codegen_flags: <defaults>
</compile_context>

<pallas_src>
import functools

import jax
import jax.numpy as jnp
import numpy as np
from jax.experimental import pallas as pl
from jax.experimental.pallas import tpu as pltpu


def _poly_layer_kernel(x_ref, a_ref, c_ref, out_ref, xpow_ref, *, degree, kp):
    # x_ref:    (TB, Kp)           lane-dense folded batch tile (f32, pad lanes = 0)
    # a_ref:    (degree*Kp, Nf)    fused block-diagonal coefficients (resident)
    # c_ref:    (1, Nf)            folded bias row, zero at every state-0 lane (resident)
    # out_ref:  (TB, Nf)           folded output tile
    # xpow_ref: (TB, degree*Kp)    VMEM scratch holding [x, x**2, ..., x**degree]
    x = x_ref[...]
    xpow_ref[:, 0:kp] = x
    xp = x
    for i in range(1, degree):
        xp = xp * x                                  # x**(i+1), exact in f32
        xpow_ref[:, i * kp:(i + 1) * kp] = xp        # 128-lane-aligned static slices

    # Single MXU matmul (K = degree*Kp), one broadcast bias add, one full store.
    out_ref[...] = (
        jnp.dot(xpow_ref[...], a_ref[...], preferred_element_type=jnp.float32)
        + c_ref[...]
    ).astype(out_ref.dtype)


def polynomial_layer(x, a, c, *, tb=16384, core_parallel=False):
    """Pallas TPU forward of PolynomialLayer.

    x: (B, centers) float
    a: (states-1, degree, centers)  -- stacked Polynomial.a parameters
    c: (states-1,)                  -- stacked Polynomial.c parameters
    returns (B, states); column 0 is zeros (matches torch.cat([zeros, ...])).

    tb            : target number of ORIGINAL samples per grid step.
    core_parallel : mark the batch grid axis CORE_PARALLEL (v7x 2-TC sharding).
    """
    B, C = x.shape
    P, degree, C2 = a.shape
    assert C == C2
    states = P + 1

    x = x.astype(jnp.float32)

    # ---- Lane folding: pack L samples per folded row --------------------------
    L = max(1, 128 // C)
    Kf = L * C
    Kp = ((Kf + 127) // 128) * 128          # lane-aligned folded feature width
    Nf = L * states                         # folded output width

    # Zero-pad the batch to a multiple of L (padded sub-samples only feed output
    # lanes that are sliced away below).
    Bp = ((B + L - 1) // L) * L
    x_f = jnp.pad(x, ((0, Bp - B), (0, 0))).reshape(Bp // L, Kf)
    if Kp != Kf:
        x_f = jnp.pad(x_f, ((0, 0), (0, Kp - Kf)))   # zero pad lanes (no NaN risk)
    Bf = Bp // L

    # ---- Fused block-diagonal coefficient matrix (built once, wrapper-side) ---
    # A_full[i*Kp + j*C + k, j*states + 1 + p] = a[p, i, k]; the state-0 column
    # of every sub-sample block and the Kp-pad rows stay zero, so the leading
    # zeros column of the layer output falls out of the single matmul.
    a_cs = jnp.pad(jnp.transpose(a.astype(jnp.float32), (1, 2, 0)),
                   ((0, 0), (0, 0), (1, 0)))                     # (degree, C, states)
    eye_l = jnp.eye(L, dtype=jnp.float32)
    a_blk = jnp.einsum('dcs,jl->djcls', a_cs, eye_l)             # (degree,L,C,L,states)
    a_blk = a_blk.reshape(degree, Kf, Nf)
    a_full = jnp.pad(a_blk, ((0, 0), (0, Kp - Kf), (0, 0))).reshape(degree * Kp, Nf)

    # Folded bias row: [0, c_0, ..., c_{P-1}] repeated per packed sub-sample.
    c_row = jnp.tile(jnp.pad(c.astype(jnp.float32), (1, 0)), L).reshape(1, Nf)

    # ---- Batch tiling: big folded tiles, clamped by an explicit VMEM budget ---
    tb_f = max(1, tb // L)                  # folded rows per tile (L samples each)
    if tb_f < Bf:
        tb_f = max(8, (tb_f // 8) * 8)      # partial tiles must be sublane-aligned
    tb_f = min(tb_f, Bf)                    # full-batch tile is always legal

    out_lanes = ((Nf + 127) // 128) * 128   # VMEM lane padding of the output block

    def _vmem_bytes(t):
        # 2x double-buffered in + out blocks, power scratch, resident params.
        return 4 * (2 * t * Kp + 2 * t * out_lanes + t * degree * Kp
                    + degree * Kp * out_lanes + out_lanes)

    vmem_budget = 20 * 1024 * 1024          # leave headroom under the 32 MiB limit
    while tb_f > 8 and _vmem_bytes(tb_f) > vmem_budget:
        tb_f = max(8, (tb_f // 2 // 8) * 8)

    grid = (pl.cdiv(Bf, tb_f),)
    # "parallel" is the portable default; CORE_PARALLEL is the explicit v7x
    # 2-TensorCore lever (no-op value evaluated only when requested).
    batch_sem = pltpu.CORE_PARALLEL if core_parallel else "parallel"

    kernel = functools.partial(_poly_layer_kernel, degree=degree, kp=Kp)
    out_f = pl.pallas_call(
        kernel,
        out_shape=jax.ShapeDtypeStruct((Bf, Nf), x.dtype),
        grid_spec=pltpu.PrefetchScalarGridSpec(
            num_scalar_prefetch=0,
            grid=grid,
            in_specs=[
                pl.BlockSpec((tb_f, Kp), lambda i: (i, 0)),           # folded x tile
                pl.BlockSpec((degree * Kp, Nf), lambda i: (0, 0)),    # fused A (resident)
                pl.BlockSpec((1, Nf), lambda i: (0, 0)),              # bias row (resident)
            ],
            out_specs=pl.BlockSpec((tb_f, Nf), lambda i: (i, 0)),
            scratch_shapes=[pltpu.VMEM((tb_f, degree * Kp), jnp.float32)],
        ),
        compiler_params=pltpu.CompilerParams(
            dimension_semantics=(batch_sem,),
            vmem_limit_bytes=32 * 1024 * 1024),
    )(x_f, a_full, c_row)

    # Un-fold and drop batch padding.
    return out_f.reshape(Bp, states)[:B]


def polynomial_layer_ref(x, a, c):
    """Pure-JAX reference mirroring the PyTorch forward exactly."""
    P, degree, _ = a.shape
    cols = [jnp.zeros((x.shape[0], 1), dtype=x.dtype)]
    for p in range(P):
        acc = 0.0
        for i in range(degree):
            acc = acc + a[p, i, :] * x ** (i + 1)
        cols.append((jnp.sum(acc, axis=1) + c[p])[:, None])
    return jnp.concatenate(cols, axis=1)


if __name__ == "__main__":
    # Small shapes consistent with the module: x is (batch, centers).
    B, centers, states, degree = 203, 16, 3, 2     # B not a multiple of the fold factor
    num_polys = states - 1

    key = jax.random.PRNGKey(0)
    kx, ka, kc = jax.random.split(key, 3)
    x = jax.random.normal(kx, (B, centers), dtype=jnp.float32)
    # Module __init__ zero-inits params; use small random values so the kernel
    # computes something non-trivial.
    a = 0.1 * jax.random.normal(ka, (num_polys, degree, centers), dtype=jnp.float32)
    c = 0.1 * jax.random.normal(kc, (num_polys,), dtype=jnp.float32)

    ref = polynomial_layer_ref(x, a, c)

    # Default config: large (here whole-batch) tile, single grid step.
    out = jax.block_until_ready(polynomial_layer(x, a, c))
    np.testing.assert_allclose(np.asarray(out), np.asarray(ref), rtol=1e-5, atol=1e-5)

    # Multi-step grid with a partial last block (correctness of the tiled path
    # only; production keeps tiles large to amortize per-grid-step overhead).
    out2 = jax.block_until_ready(polynomial_layer(x, a, c, tb=64))
    np.testing.assert_allclose(np.asarray(out2), np.asarray(ref), rtol=1e-5, atol=1e-5)

    # Centers that do not divide 128 exercise the Kf -> Kp lane-padding path.
    B2, C2, S2 = 37, 10, 2
    x2 = jax.random.normal(kx, (B2, C2), dtype=jnp.float32)
    a2 = 0.1 * jax.random.normal(ka, (S2 - 1, 2, C2), dtype=jnp.float32)
    c2 = 0.1 * jax.random.normal(kc, (S2 - 1,), dtype=jnp.float32)
    out3 = jax.block_until_ready(polynomial_layer(x2, a2, c2))
    np.testing.assert_allclose(np.asarray(out3), np.asarray(polynomial_layer_ref(x2, a2, c2)),
                               rtol=1e-5, atol=1e-5)

    print("KERNEL_OK")
</pallas_src>

<mosaic_0001>
module attributes {stable_mosaic.version = 11 : i64} {
  func.func @_poly_layer_kernel(%arg0: i32, %arg1: memref<26x128xf32, #tpu.memory_space<vmem>>, %arg2: memref<256x24xf32, #tpu.memory_space<vmem>>, %arg3: memref<1x24xf32, #tpu.memory_space<vmem>>, %arg4: memref<26x24xf32, #tpu.memory_space<vmem>>, %arg5: memref<26x256xf32, #tpu.memory_space<vmem>>) attributes {dimension_semantics = [#tpu.dimension_semantics<parallel>], iteration_bounds = array<i64: 1>, scalar_prefetch = 0 : i64, scratch_operands = 1 : i64, tpu.core_type = #tpu.core_type<tc>, window_params = [{transform_indices = @transform_0, window_bounds = array<i64: 26, 128>}, {pipeline_mode = #tpu.pipeline_mode<synchronous>, transform_indices = @transform_1, window_bounds = array<i64: 256, 24>}, {pipeline_mode = #tpu.pipeline_mode<synchronous>, transform_indices = @transform_2, window_bounds = array<i64: 1, 24>}, {transform_indices = @transform_3, window_bounds = array<i64: 26, 24>}]} {
    %c0 = arith.constant 0 : index
    %c0_0 = arith.constant 0 : index
    %0 = vector.load %arg1[%c0, %c0_0] : memref<26x128xf32, #tpu.memory_space<vmem>>, vector<26x128xf32>
    %c0_1 = arith.constant 0 : index
    %c0_2 = arith.constant 0 : index
    %1 = vector.load %arg5[%c0_1, %c0_2] : memref<26x256xf32, #tpu.memory_space<vmem>>, vector<26x128xf32>
    tpu.vector_store %arg5[%c0_1, %c0_2], %0 {strides = array<i32>} : memref<26x256xf32, #tpu.memory_space<vmem>>, vector<26x128xf32>,
    %2 = arith.mulf %0, %0 : vector<26x128xf32>
    %c0_3 = arith.constant 0 : index
    %c128 = arith.constant 128 : index
    %3 = vector.load %arg5[%c0_3, %c128] : memref<26x256xf32, #tpu.memory_space<vmem>>, vector<26x128xf32>
    tpu.vector_store %arg5[%c0_3, %c128], %2 {strides = array<i32>} : memref<26x256xf32, #tpu.memory_space<vmem>>, vector<26x128xf32>,
    %c0_4 = arith.constant 0 : index
    %c0_5 = arith.constant 0 : index
    %4 = vector.load %arg5[%c0_4, %c0_5] : memref<26x256xf32, #tpu.memory_space<vmem>>, vector<26x256xf32>
    %c0_6 = arith.constant 0 : index
    %c0_7 = arith.constant 0 : index
    %5 = vector.load %arg2[%c0_6, %c0_7] : memref<256x24xf32, #tpu.memory_space<vmem>>, vector<256x24xf32>
    %cst = arith.constant dense<0.000000e+00> : vector<26x24xf32>
    %6 = tpu.matmul %4, %5, %cst {dimension_numbers = #tpu.dot_dimension_numbers<[1], [0], [0], [1], [0, 0, 1, 1], [], []>} : vector<26x256xf32>, vector<256x24xf32>, vector<26x24xf32> -> vector<26x24xf32>
    %c0_8 = arith.constant 0 : index
    %c0_9 = arith.constant 0 : index
    %7 = vector.load %arg3[%c0_8, %c0_9] : memref<1x24xf32, #tpu.memory_space<vmem>>, vector<1x24xf32>
    %8 = vector.broadcast %7 : vector<1x24xf32> to vector<26x24xf32>
    %9 = arith.addf %6, %8 : vector<26x24xf32>
    %c0_10 = arith.constant 0 : index
    %c0_11 = arith.constant 0 : index
    %10 = vector.load %arg4[%c0_10, %c0_11] : memref<26x24xf32, #tpu.memory_space<vmem>>, vector<26x24xf32>
    tpu.vector_store %arg4[%c0_10, %c0_11], %9 {strides = array<i32>} : memref<26x24xf32, #tpu.memory_space<vmem>>, vector<26x24xf32>,
    return
  }
  func.func @transform_0(%arg0: i32) -> (i32, i32) {
    %c0_i32 = arith.constant 0 : i32
    %c0_i32_0 = arith.constant 0 : i32
    return %arg0, %c0_i32 : i32, i32
  }
  func.func @transform_1(%arg0: i32) -> (i32, i32) {
    %c0_i32 = arith.constant 0 : i32
    %c0_i32_0 = arith.constant 0 : i32
    %c0_i32_1 = arith.constant 0 : i32
    return %c0_i32, %c0_i32_0 : i32, i32
  }
  func.func @transform_2(%arg0: i32) -> (i32, i32) {
    %c0_i32 = arith.constant 0 : i32
    %c0_i32_0 = arith.constant 0 : i32
    %c0_i32_1 = arith.constant 0 : i32
    return %c0_i32, %c0_i32_0 : i32, i32
  }
  func.func @transform_3(%arg0: i32) -> (i32, i32) {
    %c0_i32 = arith.constant 0 : i32
    %c0_i32_0 = arith.constant 0 : i32
    return %arg0, %c0_i32 : i32, i32
  }
}

</mosaic_0001>

<bundles_post_ra>
// kernel: tpu_custom_call.1
= control target key start
LH: loop header
LB: loop body
LE: loop exit
PB: predicated region body
PF: predicated region fallthrough
CT: control target
= control target key end

     0   :  { %vm132_vm0 = vcmask 195584   ;;  %vm136_vm1 = vcmask 189440   ;;  %s336_s1 = inlined_call_operand.vmem [shape: f32[256,24], index: 1, kind: input, shape index: {}]   ;;  %s337_s0 = inlined_call_operand.vmem [shape: f32[26,128], index: 0, kind: input, shape index: {}]   ;;  %s338_s2 = inlined_call_operand.vmem [shape: f32[1,24], index: 2, kind: input, shape index: {}]   ;;  %s339_s3 = inlined_call_operand.vmem [shape: f32[26,24], index: 3, kind: output, shape index: {}]  }
   0x1   :  { %v53_v0 = vld [vmem:[%s336_s1 + $0x78] sm:$0xff]  ;;  %v52_v1 = vld [vmem:[%s336_s1 + $0x70] sm:$0xff]  ;;  %v51_v4 = vld [vmem:[%s336_s1 + $0x68] sm:$0xff] }
   0x2   :  { %v69_v2 = vld [vmem:[%s336_s1 + $0xf8] sm:$0xff]  ;;  %142 = vmatpush.msra.mxu2 %v53_v0  ;;  %v68_v3 = vld [vmem:[%s336_s1 + $0xf0] sm:$0xff]  ;;  %74 = vmatpush.msra.mxu0 %v53_v0  ;;  %v67_v5 = vld [vmem:[%s336_s1 + $0xe8] sm:$0xff] }
   0x3   :  { %158 = vmatpush.msra.mxu3 %v69_v2  ;;  %103 = vmatpush.msra.mxu1 %v69_v2  ;;  %v50_v6 = vld [vmem:[%s336_s1 + $0x60] sm:$0xff]  ;;  %v49_v8 = vld [vmem:[%s336_s1 + $0x58] sm:$0xff]  ;;  %v48_v10 = vld [vmem:[%s336_s1 + $0x50] sm:$0xff] }
   0x4   :  { %143 = vmatpush.msra.mxu2 %v52_v1  ;;  %75 = vmatpush.msra.mxu0 %v52_v1  ;;  %v66_v7 = vld [vmem:[%s336_s1 + $0xe0] sm:$0xff]  ;;  %v65_v9 = vld [vmem:[%s336_s1 + $0xd8] sm:$0xff]  ;;  %v64_v11 = vld [vmem:[%s336_s1 + $0xd0] sm:$0xff] }
   0x5   :  { %159 = vmatpush.msra.mxu3 %v68_v3  ;;  %104 = vmatpush.msra.mxu1 %v68_v3  ;;  %v47_v12 = vld [vmem:[%s336_s1 + $0x48] sm:$0xff]  ;;  %v240_v14 = vld [vmem:[%s337_s0 + $0x10] sm:$0xff]  ;;  %v249_v16 = vld [vmem:[%s337_s0] sm:$0xff] }
   0x6   :  { %144 = vmatpush.msra.mxu2 %v51_v4  ;;  %76 = vmatpush.msra.mxu0 %v51_v4  ;;  %v63_v13 = vld [vmem:[%s336_s1 + $0xc8] sm:$0xff]  ;;  %v244_v15 = vmul.f32 %v240_v14, %v240_v14  ;;  %v17_v17 = vld [vmem:[%s337_s0 + $0x18] sm:$0x3]  ;;  %v46_v18 = vld [vmem:[%s336_s1 + $0x40] sm:$0xff]  ;;  %v22_v21 = vmul.f32 %v249_v16, %v249_v16 }
   0x7   :  { %160 = vmatpush.msra.mxu3 %v67_v5  ;;  %105 = vmatpush.msra.mxu1 %v67_v5  ;;  %v62_v19 = vld [vmem:[%s336_s1 + $0xc0] sm:$0xff]  ;;  %v25_v20 = vmul.f32 %v17_v17, %v17_v17  ;;  %v265_v22 = vld [vmem:[%s337_s0 + $0x8] sm:$0xff]  ;;  %v45_v23 = vld [vmem:[%s336_s1 + $0x38] sm:$0xff]  ;;  %21 = vst [vmem:[#allocation2 + $0x20] sm:$0x3] %v17_v17 }
   0x8   :  { %145 = vmatpush.msra.mxu2 %v50_v6  ;;  %77 = vmatpush.msra.mxu0 %v50_v6  ;;  %v61_v24 = vld [vmem:[%s336_s1 + $0xb8] sm:$0xff]  ;;  %v44_v25 = vld [vmem:[%s336_s1 + $0x30] sm:$0xff]  ;;  %v23_v27 = vmul.f32 %v265_v22, %v265_v22  ;;  %v43_v28 = vld [vmem:[%s336_s1 + $0x28] sm:$0xff] }
   0x9   :  { %161 = vmatpush.msra.mxu3 %v66_v7  ;;  %106 = vmatpush.msra.mxu1 %v66_v7  ;;  %v60_v26 = vld [vmem:[%s336_s1 + $0xb0] sm:$0xff]  ;;  %29 = vst [vmem:[#allocation2 + $0x38] sm:$0x3] %v25_v20  ;;  %v59_v29 = vld [vmem:[%s336_s1 + $0xa8] sm:$0xff]  ;;  %v42_v30 = vld [vmem:[%s336_s1 + $0x20] sm:$0xff] }
   0xa   :  { %146 = vmatpush.msra.mxu2 %v49_v8  ;;  %78 = vmatpush.msra.mxu0 %v49_v8  ;;  %v58_v31 = vld [vmem:[%s336_s1 + $0xa0] sm:$0xff]  ;;  %v41_v32 = vld [vmem:[%s336_s1 + $0x18] sm:$0xff]  ;;  %v40_v34 = vld [vmem:[%s336_s1 + $0x10] sm:$0xff] }
   0xb   :  { %162 = vmatpush.msra.mxu3 %v65_v9  ;;  %107 = vmatpush.msra.mxu1 %v65_v9  ;;  %v57_v33 = vld [vmem:[%s336_s1 + $0x98] sm:$0xff]  ;;  %v56_v35 = vld [vmem:[%s336_s1 + $0x90] sm:$0xff]  ;;  %v39_v36 = vld [vmem:[%s336_s1 + $0x8] sm:$0xff] }
   0xc   :  { %147 = vmatpush.msra.mxu2 %v48_v10  ;;  %79 = vmatpush.msra.mxu0 %v48_v10  ;;  %v55_v37 = vld [vmem:[%s336_s1 + $0x88] sm:$0xff]  ;;  %v38_v38 = vld [vmem:[%s336_s1] sm:$0xff] }
   0xd   :  { %163 = vmatpush.msra.mxu3 %v64_v11  ;;  %108 = vmatpush.msra.mxu1 %v64_v11  ;;  %v54_v39 = vld [vmem:[%s336_s1 + $0x80] sm:$0xff] }
   0xe   :  { %148 = vmatpush.msra.mxu2 %v47_v12  ;;  %80 = vmatpush.msra.mxu0 %v47_v12  ;;  %v36_v40 = vld [vmem:[#allocation2 + $0x20] sm:$0x3] }
   0xf   :  { %164 = vmatpush.msra.mxu3 %v63_v13  ;;  %109 = vmatpush.msra.mxu1 %v63_v13  ;;  %v174_v42 = vld [vmem:[%s338_s2] ss:$0 sm:$0xff] }
  0x10   :  { %149 = vmatpush.msra.mxu2 %v46_v18  ;;  %81 = vmatpush.msra.mxu0 %v46_v18  ;;  %v37_v41 = vld [vmem:[#allocation2 + $0x38] sm:$0x3] }
  0x11   :  { %165 = vmatpush.msra.mxu3 %v62_v19  ;;  %110 = vmatpush.msra.mxu1 %v62_v19 }
  0x12   :  { %150 = vmatpush.msra.mxu2 %v45_v23  ;;  %82 = vmatpush.msra.mxu0 %v45_v23 }
  0x13   :  { %166 = vmatpush.msra.mxu3 %v61_v24  ;;  %111 = vmatpush.msra.mxu1 %v61_v24 }
  0x14   :  { %151 = vmatpush.msra.mxu2 %v44_v25  ;;  %83 = vmatpush.msra.mxu0 %v44_v25 }
  0x15   :  { %167 = vmatpush.msra.mxu3 %v60_v26  ;;  %112 = vmatpush.msra.mxu1 %v60_v26 }
  0x16   :  { %152 = vmatpush.msra.mxu2 %v43_v28  ;;  %84 = vmatpush.msra.mxu0 %v43_v28 }
  0x17   :  { %168 = vmatpush.msra.mxu3 %v59_v29  ;;  %113 = vmatpush.msra.mxu1 %v59_v29 }
  0x18   :  { %153 = vmatpush.msra.mxu2 %v42_v30  ;;  %85 = vmatpush.msra.mxu0 %v42_v30 }
  0x19   :  { %169 = vmatpush.msra.mxu3 %v58_v31  ;;  %114 = vmatpush.msra.mxu1 %v58_v31 }
  0x1a   :  { %154 = vmatpush.msra.mxu2 %v41_v32  ;;  %86 = vmatpush.msra.mxu0 %v41_v32 }
  0x1b   :  { %170 = vmatpush.msra.mxu3 %v57_v33  ;;  %115 = vmatpush.msra.mxu1 %v57_v33 }
  0x1c   :  { %155 = vmatpush.msra.mxu2 %v40_v34  ;;  %87 = vmatpush.msra.mxu0 %v40_v34 }
  0x1d   :  { %171 = vmatpush.msra.mxu3 %v56_v35  ;;  %116 = vmatpush.msra.mxu1 %v56_v35 }
  0x1e   :  { %156 = vmatpush.msra.mxu2 %v39_v36  ;;  %88 = vmatpush.msra.mxu0 %v39_v36 }
  0x1f   :  { %172 = vmatpush.msra.mxu3 %v55_v37  ;;  %117 = vmatpush.msra.mxu1 %v55_v37 }
  0x20   :  { %157 = vmatpush.msra.mxu2 %v38_v38  ;;  %89 = vmatpush.msra.mxu0 %v38_v38 }
  0x21   :  { %173 = vmatpush.msra.mxu3 %v54_v39  ;;  %96 = vmatmul.f32.vlgmr.msra.gmra.mxu2 %v240_v14 }
  0x22   :  { %125 = vmatmul.f32.vlgmr.msra.gmra.mxu3 %v244_v15  ;;  %118 = vmatpush.msra.mxu1 %v54_v39 }
  0x23   :  { %90 = vmatmul.f32.vlgmr.msra.gmra.mxu0 %v249_v16  ;;  %119 = vmatmul.f32.vlgmr.msra.gmra.mxu1 %v22_v21 }
  0x29   :  { %99 = vmatmul.f32.gmra.mxu2 %v36_v40 }
  0x2a   :  { %128 = vmatmul.f32.gmra.mxu3 %v37_v41 }
  0x2b   :  { %93 = vmatmul.f32.gmra.mxu0 %v265_v22  ;;  %122 = vmatmul.f32.gmra.mxu1 %v23_v27 }
  0xa0   :  { %v91_v43 = vpop.f32.mrf.mxu0  ;;  %v120_v44 = vpop.f32.mrf.mxu1 }
  0xa1   :  { %v92_v45 = vadd.f32 %v174_v42, %v91_v43 }
  0xa3   :  { %v121_v46 = vadd.f32 %v120_v44, %v92_v45 }
  0xa4   :  { %v97_v47 = vpop.f32.mrf.mxu2 }
  0xa5   :  { %v126_v48 = vpop.f32.mrf.mxu3  ;;  %v98_v49 = vadd.f32 %v174_v42, %v97_v47  ;;  %133 = vst.msk [vmem:[%s339_s3] sm:$0xff] %vm132_vm0, %v121_v46 }
  0xa7   :  { %v127_v50 = vadd.f32 %v126_v48, %v98_v49 }
  0xa8   :  { %v94_v51 = vpop.f32.mrf.mxu0  ;;  %v123_v52 = vpop.f32.mrf.mxu1 }
  0xa9   :  { %135 = vst.msk [vmem:[%s339_s3 + $0x10] sm:$0xff] %vm132_vm0, %v127_v50  ;;  %v95_v53 = vadd.f32 %v174_v42, %v94_v51 }
  0xab   :  { %v124_v54 = vadd.f32 %v123_v52, %v95_v53 }
  0xac   :  { %v100_v55 = vpop.f32.mrf.mxu2 }
  0xad   :  { %v129_v56 = vpop.f32.mrf.mxu3  ;;  %v101_v57 = vadd.f32 %v174_v42, %v100_v55  ;;  %134 = vst.msk [vmem:[%s339_s3 + $0x8] sm:$0xff] %vm132_vm0, %v124_v54 }
  0xaf   :  { %v130_v58 = vadd.f32 %v129_v56, %v101_v57 }
  0xb1   :  { %137 = vst.msk [vmem:[%s339_s3 + $0x18] sm:$0x3] %vm136_vm1, %v130_v58 }

</bundles_post_ra>
